<compile_context>
chip_gen: v7x
topology: tpu7x:2x2x1
jax: 0.10.0
libtpu: 0.0.40
codegen_flags: <defaults>
</compile_context>

<pallas_src>
import functools

import jax
import jax.numpy as jnp
from jax.experimental import pallas as pl
from jax.experimental.pallas import tpu as pltpu


def _round_up(n, m):
    return ((n + m - 1) // m) * m


def critic_kernel(x_ref, w1_ref, b1_ref, w2_ref, b2_ref, w3_ref, b3_ref, o_ref):
    """Fused relu(x@W1+b1) -> relu(@W2+b2) -> @W3+b3 on one batch tile.

    x_ref : (TB, in_dim)  f32, streamed per grid step
    w*_ref: f32 weights (in, out) layout, constant index_map -> VMEM-resident
    b*_ref: (1, out) f32 biases, resident
    o_ref : (TB, action_dim) f32, narrow store (HBM array is narrow too)
    """
    h1 = jnp.dot(x_ref[...], w1_ref[...], preferred_element_type=jnp.float32)
    h1 = jnp.maximum(h1 + b1_ref[...], 0.0)
    h2 = jnp.dot(h1, w2_ref[...], preferred_element_type=jnp.float32)
    h2 = jnp.maximum(h2 + b2_ref[...], 0.0)
    out = jnp.dot(h2, w3_ref[...], preferred_element_type=jnp.float32)
    o_ref[...] = (out + b3_ref[...]).astype(o_ref.dtype)


@functools.partial(jax.jit, static_argnames=("block_b",))
def critic_forward(x, params, *, block_b=512):
    """x: (batch, input_dim) f32. Returns (batch, action_dim) f32.

    block_b: rows per grid step.  For v7x pick it so the grid length is >= 2
    per TensorCore on large batches (e.g. 1024-2048 rows for batch >= 8K);
    the per-step footprint stays far below VMEM on every generation.
    """
    w1, b1, w2, b2, w3, b3 = params
    batch, in_dim = x.shape
    hid = w1.shape[1]
    act = w3.shape[1]

    # Biases as (1, N) so they broadcast over the batch tile inside the kernel.
    b1r = b1.reshape(1, hid)
    b2r = b2.reshape(1, hid)
    b3r = b3.reshape(1, act)

    # Tile rows: multiple of 8 (sublane rule), never larger than needed.
    block_b = _round_up(block_b, 8)
    block_rows = min(block_b, _round_up(batch, 8))
    grid = (pl.cdiv(batch, block_rows),)  # partial last tile handled by Pallas

    const = lambda i: (0, 0)  # weights/biases: same block every step -> resident

    out = pl.pallas_call(
        critic_kernel,
        out_shape=jax.ShapeDtypeStruct((batch, act), jnp.float32),
        grid=grid,
        in_specs=[
            pl.BlockSpec((block_rows, in_dim), lambda i: (i, 0)),  # x streamed
            pl.BlockSpec((in_dim, hid), const),                    # W1 resident
            pl.BlockSpec((1, hid), const),                         # b1
            pl.BlockSpec((hid, hid), const),                       # W2
            pl.BlockSpec((1, hid), const),                         # b2
            pl.BlockSpec((hid, act), const),                       # W3
            pl.BlockSpec((1, act), const),                         # b3
        ],
        out_specs=pl.BlockSpec((block_rows, act), lambda i: (i, 0)),
        compiler_params=pltpu.CompilerParams(
            dimension_semantics=("parallel",),  # shard batch tiles across TCs (v7x)
        ),
    )(x, w1, b1r, w2, b2r, w3, b3r)

    return out


def init_linear(key, fan_in, fan_out):
    """PyTorch nn.Linear default init: U(-1/sqrt(fan_in), 1/sqrt(fan_in)).
    Weight stored as (in_features, out_features) so x @ W == x @ W_pt.T."""
    kw, kb = jax.random.split(key)
    bound = 1.0 / jnp.sqrt(jnp.float32(fan_in))
    w = jax.random.uniform(kw, (fan_in, fan_out), jnp.float32, -bound, bound)
    b = jax.random.uniform(kb, (fan_out,), jnp.float32, -bound, bound)
    return w, b


def reference_forward(x, params):
    w1, b1, w2, b2, w3, b3 = params
    h1 = jnp.maximum(x @ w1 + b1, 0.0)
    h2 = jnp.maximum(h1 @ w2 + b2, 0.0)
    return h2 @ w3 + b3


if __name__ == "__main__":
    # Shapes consistent with the module (small test sizes).
    agent_num, state_dim, action_dim = 3, 5, 4
    input_dim = 1 + state_dim * agent_num + agent_num  # = 19
    hidden = 64
    batch = 40        # small folded batch; deliberately NOT a tile multiple
    block_b = 16      # small tile -> 3 grid steps incl. one partial block

    key = jax.random.PRNGKey(0)
    k_x, k1, k2, k3 = jax.random.split(key, 4)

    x = jax.random.normal(k_x, (batch, input_dim), jnp.float32)
    w1, b1 = init_linear(k1, input_dim, hidden)
    w2, b2 = init_linear(k2, hidden, hidden)
    w3, b3 = init_linear(k3, hidden, action_dim)
    params = (w1, b1, w2, b2, w3, b3)

    ref = reference_forward(x, params)

    # Multi-step grid with a partial last tile.
    out = critic_forward(x, params, block_b=block_b)
    out = jax.block_until_ready(out)
    assert out.shape == (batch, action_dim)
    assert jnp.allclose(out, ref, atol=2e-2, rtol=2e-2), "mismatch (tiled path)"

    # Default (single-tile) path.
    out2 = critic_forward(x, params)
    out2 = jax.block_until_ready(out2)
    assert jnp.allclose(out2, ref, atol=2e-2, rtol=2e-2), "mismatch (single tile)"

    print("KERNEL_OK")
</pallas_src>

<mosaic_0001>
module attributes {stable_mosaic.version = 11 : i64} {
  func.func @critic_kernel(%arg0: i32, %arg1: memref<16x19xf32, #tpu.memory_space<vmem>>, %arg2: memref<19x64xf32, #tpu.memory_space<vmem>>, %arg3: memref<1x64xf32, #tpu.memory_space<vmem>>, %arg4: memref<64x64xf32, #tpu.memory_space<vmem>>, %arg5: memref<1x64xf32, #tpu.memory_space<vmem>>, %arg6: memref<64x4xf32, #tpu.memory_space<vmem>>, %arg7: memref<1x4xf32, #tpu.memory_space<vmem>>, %arg8: memref<16x4xf32, #tpu.memory_space<vmem>>) attributes {dimension_semantics = [#tpu.dimension_semantics<parallel>], iteration_bounds = array<i64: 3>, scalar_prefetch = 0 : i64, scratch_operands = 0 : i64, tpu.core_type = #tpu.core_type<tc>, window_params = [{transform_indices = @transform_0, window_bounds = array<i64: 16, 19>}, {pipeline_mode = #tpu.pipeline_mode<synchronous>, transform_indices = @transform_1, window_bounds = array<i64: 19, 64>}, {pipeline_mode = #tpu.pipeline_mode<synchronous>, transform_indices = @transform_2, window_bounds = array<i64: 1, 64>}, {pipeline_mode = #tpu.pipeline_mode<synchronous>, transform_indices = @transform_3, window_bounds = array<i64: 64, 64>}, {pipeline_mode = #tpu.pipeline_mode<synchronous>, transform_indices = @transform_4, window_bounds = array<i64: 1, 64>}, {pipeline_mode = #tpu.pipeline_mode<synchronous>, transform_indices = @transform_5, window_bounds = array<i64: 64, 4>}, {pipeline_mode = #tpu.pipeline_mode<synchronous>, transform_indices = @transform_6, window_bounds = array<i64: 1, 4>}, {transform_indices = @transform_7, window_bounds = array<i64: 16, 4>}]} {
    %c0 = arith.constant 0 : index
    %c0_0 = arith.constant 0 : index
    %0 = vector.load %arg1[%c0, %c0_0] : memref<16x19xf32, #tpu.memory_space<vmem>>, vector<16x19xf32>
    %c0_1 = arith.constant 0 : index
    %c0_2 = arith.constant 0 : index
    %1 = vector.load %arg2[%c0_1, %c0_2] : memref<19x64xf32, #tpu.memory_space<vmem>>, vector<19x64xf32>
    %cst = arith.constant dense<0.000000e+00> : vector<16x64xf32>
    %2 = tpu.matmul %0, %1, %cst {dimension_numbers = #tpu.dot_dimension_numbers<[1], [0], [0], [1], [0, 0, 1, 1], [], []>} : vector<16x19xf32>, vector<19x64xf32>, vector<16x64xf32> -> vector<16x64xf32>
    %c0_3 = arith.constant 0 : index
    %c0_4 = arith.constant 0 : index
    %3 = vector.load %arg3[%c0_3, %c0_4] : memref<1x64xf32, #tpu.memory_space<vmem>>, vector<1x64xf32>
    %4 = vector.broadcast %3 : vector<1x64xf32> to vector<16x64xf32>
    %5 = arith.addf %2, %4 : vector<16x64xf32>
    %cst_5 = arith.constant 0.000000e+00 : f32
    %6 = vector.broadcast %cst_5 : f32 to vector<16x64xf32>
    %7 = arith.maximumf %5, %6 : vector<16x64xf32>
    %c0_6 = arith.constant 0 : index
    %c0_7 = arith.constant 0 : index
    %8 = vector.load %arg4[%c0_6, %c0_7] : memref<64x64xf32, #tpu.memory_space<vmem>>, vector<64x64xf32>
    %cst_8 = arith.constant dense<0.000000e+00> : vector<16x64xf32>
    %9 = tpu.matmul %7, %8, %cst_8 {dimension_numbers = #tpu.dot_dimension_numbers<[1], [0], [0], [1], [0, 0, 1, 1], [], []>} : vector<16x64xf32>, vector<64x64xf32>, vector<16x64xf32> -> vector<16x64xf32>
    %c0_9 = arith.constant 0 : index
    %c0_10 = arith.constant 0 : index
    %10 = vector.load %arg5[%c0_9, %c0_10] : memref<1x64xf32, #tpu.memory_space<vmem>>, vector<1x64xf32>
    %11 = vector.broadcast %10 : vector<1x64xf32> to vector<16x64xf32>
    %12 = arith.addf %9, %11 : vector<16x64xf32>
    %cst_11 = arith.constant 0.000000e+00 : f32
    %13 = vector.broadcast %cst_11 : f32 to vector<16x64xf32>
    %14 = arith.maximumf %12, %13 : vector<16x64xf32>
    %c0_12 = arith.constant 0 : index
    %c0_13 = arith.constant 0 : index
    %15 = vector.load %arg6[%c0_12, %c0_13] : memref<64x4xf32, #tpu.memory_space<vmem>>, vector<64x4xf32>
    %cst_14 = arith.constant dense<0.000000e+00> : vector<16x4xf32>
    %16 = tpu.matmul %14, %15, %cst_14 {dimension_numbers = #tpu.dot_dimension_numbers<[1], [0], [0], [1], [0, 0, 1, 1], [], []>} : vector<16x64xf32>, vector<64x4xf32>, vector<16x4xf32> -> vector<16x4xf32>
    %c0_15 = arith.constant 0 : index
    %c0_16 = arith.constant 0 : index
    %17 = vector.load %arg7[%c0_15, %c0_16] : memref<1x4xf32, #tpu.memory_space<vmem>>, vector<1x4xf32>
    %18 = vector.broadcast %17 : vector<1x4xf32> to vector<16x4xf32>
    %19 = arith.addf %16, %18 : vector<16x4xf32>
    %c0_17 = arith.constant 0 : index
    %c0_18 = arith.constant 0 : index
    %20 = vector.load %arg8[%c0_17, %c0_18] : memref<16x4xf32, #tpu.memory_space<vmem>>, vector<16x4xf32>
    tpu.vector_store %arg8[%c0_17, %c0_18], %19 {strides = array<i32>} : memref<16x4xf32, #tpu.memory_space<vmem>>, vector<16x4xf32>,
    return
  }
  func.func @transform_0(%arg0: i32) -> (i32, i32) {
    %c0_i32 = arith.constant 0 : i32
    %c0_i32_0 = arith.constant 0 : i32
    return %arg0, %c0_i32 : i32, i32
  }
  func.func @transform_1(%arg0: i32) -> (i32, i32) {
    %c0_i32 = arith.constant 0 : i32
    %c0_i32_0 = arith.constant 0 : i32
    %c0_i32_1 = arith.constant 0 : i32
    return %c0_i32, %c0_i32_0 : i32, i32
  }
  func.func @transform_2(%arg0: i32) -> (i32, i32) {
    %c0_i32 = arith.constant 0 : i32
    %c0_i32_0 = arith.constant 0 : i32
    %c0_i32_1 = arith.constant 0 : i32
    return %c0_i32, %c0_i32_0 : i32, i32
  }
  func.func @transform_3(%arg0: i32) -> (i32, i32) {
    %c0_i32 = arith.constant 0 : i32
    %c0_i32_0 = arith.constant 0 : i32
    %c0_i32_1 = arith.constant 0 : i32
    return %c0_i32, %c0_i32_0 : i32, i32
  }
  func.func @transform_4(%arg0: i32) -> (i32, i32) {
    %c0_i32 = arith.constant 0 : i32
    %c0_i32_0 = arith.constant 0 : i32
    %c0_i32_1 = arith.constant 0 : i32
    return %c0_i32, %c0_i32_0 : i32, i32
  }
  func.func @transform_5(%arg0: i32) -> (i32, i32) {
    %c0_i32 = arith.constant 0 : i32
    %c0_i32_0 = arith.constant 0 : i32
    %c0_i32_1 = arith.constant 0 : i32
    return %c0_i32, %c0_i32_0 : i32, i32
  }
  func.func @transform_6(%arg0: i32) -> (i32, i32) {
    %c0_i32 = arith.constant 0 : i32
    %c0_i32_0 = arith.constant 0 : i32
    %c0_i32_1 = arith.constant 0 : i32
    return %c0_i32, %c0_i32_0 : i32, i32
  }
  func.func @transform_7(%arg0: i32) -> (i32, i32) {
    %c0_i32 = arith.constant 0 : i32
    %c0_i32_0 = arith.constant 0 : i32
    return %arg0, %c0_i32 : i32, i32
  }
}

</mosaic_0001>

<bundles_post_ra>
// kernel: critic_forward.1
= control target key start
LH: loop header
LB: loop body
LE: loop exit
PB: predicated region body
PF: predicated region fallthrough
CT: control target
= control target key end

     0   :  { %s1178_s24 = smov 0   ;;  %s1180_s25 = smov 0   ;;  %s1333_s0 = inlined_call_operand.vmem [shape: f32[40,19], index: 0, kind: input, shape index: {}]   ;;  %s1334_s1 = inlined_call_operand.vmem [shape: f32[19,64], index: 1, kind: input, shape index: {}]   ;;  %s1335_s2 = inlined_call_operand.vmem [shape: f32[1,64], index: 2, kind: input, shape index: {}]   ;;  %s1336_s3 = inlined_call_operand.vmem [shape: f32[64,64], index: 3, kind: input, shape index: {}]   ;;  %s1337_s4 = inlined_call_operand.vmem [shape: f32[1,64], index: 4, kind: input, shape index: {}]   ;;  %s1338_s5 = inlined_call_operand.vmem [shape: f32[64,4], index: 5, kind: input, shape index: {}]   ;;  %s1339_s6 = inlined_call_operand.vmem [shape: f32[1,4], index: 6, kind: input, shape index: {}]   ;;  %s1340_s7 = inlined_call_operand.vmem [shape: f32[40,4], index: 7, kind: output, shape index: {}]  }
   0x1   :  { %s1182_s26 = smov 0  }
   0x2 LB: > { %s1191_s27 = sadd.s32 4294967295, %s1104_s26   ;;  %s1193_s28 = sadd.s32 1, %s1104_s26   ;;  %s1104_s26 = sphi %s1182_s26, %s1344_s26   ;;  %s1100_s25 = sphi %s1180_s25, %s1343_s25   ;;  %s1096_s24 = sphi %s1178_s24, %s1342_s24  }
   0x3   : > { %s173_s29 = ssub.s32 %s1104_s26, %s1193_s28  ;;  %s176_s30 = sadd.s32 1, %s1100_s25 }
   0x4   : > { %p174_p0 = scmp.eq.s32.totalorder %s173_s29, 0  ;;  %p186_p1 = scmp.ne.s32.totalorder %s1100_s25, %s1096_s24 }
   0x5   : > { %p187_p2 = scmp.eq.s32.totalorder %s1191_s27, 2  ;;  %p820_p3 = scmp.ge.s32.totalorder %s1104_s26, 1 }
   0x6   : > { %s1201_s8 = scalar_select %p174_p0, %s1100_s25, %s176_s30  }
   0x7   : > { %p1203_p4 = por %p187_p2, %p186_p1  ;;  %p246_p5 = scmp.lt.s32.totalorder %s1104_s26, 4 }
   0x9   : > { %p247_p6 = pnand %p820_p3, %p246_p5 }
   0xa   : > { %v302_v0 = vld [vmem:[%s1334_s1] sm:$0xff] (!%p247_p6)  ;;  %v303_v1 = vld [vmem:[%s1334_s1 + $0x8] sm:$0xff] (!%p247_p6)  ;;  %s1214_s14 = sshll.u32 (!%p247_p6), %s1191_s27, 1  ;;  %v402_v5 = vld [vmem:[%s1336_s3 + $0x10] sm:$0xff] (!%p247_p6)  ;;  %vm319_vm0 = vcmask (!%p247_p6), 1042432   ;;  %vm312_vm1 = vcmask (!%p247_p6), 154624  }
   0xb   : > { %250 = sbr.rel (%p247_p6) target bundleno = 725 (0x2d5), region = 48  ;;  %v926_v2 = vpack.c.bf16 (!%p247_p6), %v303_v1, %v302_v0  ;;  %p286_p7 = scmp.lt.s32.totalorder (!%p247_p6), %s1214_s14, 4  ;;  %v400_v3 = vld [vmem:[%s1336_s3] sm:$0xff] (!%p247_p6)  ;;  %v401_v4 = vld [vmem:[%s1336_s3 + $0x8] sm:$0xff] (!%p247_p6)  ;;  %v304_v6 = vld [vmem:[%s1334_s1 + $0x10] sm:$0x7] (!%p247_p6) }
   0xc   : > { %v930_v7 = vpack.c.bf16 (!%p247_p6), %v401_v4, %v400_v3  ;;  %v403_v8 = vld [vmem:[%s1336_s3 + $0x18] sm:$0xff] (!%p247_p6)  ;;  %v404_v10 = vld [vmem:[%s1336_s3 + $0x20] sm:$0xff] (!%p247_p6)  ;;  %v405_v11 = vld [vmem:[%s1336_s3 + $0x28] sm:$0xff] (!%p247_p6)  ;;  %vm415_vm2 = vcmask (!%p247_p6), 523264   ;;  %s278_s30 = sand.u32 (!%p247_p6), 1, %s1096_s24   ;;  %vm595_vm3 = vcmask (!%p247_p6), 31744  }
   0xd   : > { %927 = vmatprep.subr.bf16.mxu0 (!%p247_p6), %v926_v2  ;;  %v934_v9 = vpack.c.bf16 (!%p247_p6), %v403_v8, %v402_v5  ;;  %v938_v12 = vpack.c.bf16 (!%p247_p6), %v405_v11, %v404_v10  ;;  %v406_v15 = vld [vmem:[%s1336_s3 + $0x30] sm:$0xff] (!%p247_p6)  ;;  %v407_v16 = vld [vmem:[%s1336_s3 + $0x38] sm:$0xff] (!%p247_p6)  ;;  %v499_v18 = vld [vmem:[%s1338_s5] sm:$0xff] (!%p247_p6)  ;;  %s821_s10 = sshll.u32 (!%p247_p6), %s278_s30, 4 }
   0xe   : > { %929 = vmatpush3.bf16.msra.mxu0 (!%p247_p6), %v926_v2  ;;  %931 = vmatprep.subr.bf16.mxu1 (!%p247_p6), %v930_v7  ;;  %v942_v17 = vpack.c.bf16 (!%p247_p6), %v407_v16, %v406_v15  ;;  %v500_v19 = vld [vmem:[%s1338_s5 + $0x8] sm:$0xff] (!%p247_p6)  ;;  %v501_v20 = vld [vmem:[%s1338_s5 + $0x10] sm:$0xff] (!%p247_p6)  ;;  %v502_v22 = vld [vmem:[%s1338_s5 + $0x18] sm:$0xff] (!%p247_p6) }
   0xf   : > { %883 = vmatprep.subr.msk.mxu0 (!%p247_p6), %vm319_vm0, %v304_v6  ;;  %933 = vmatpush3.bf16.msra.mxu1 (!%p247_p6), %v930_v7  ;;  %v946_v21 = vpack.c.bf16 (!%p247_p6), %v500_v19, %v499_v18  ;;  %v950_v23 = vpack.c.bf16 (!%p247_p6), %v502_v22, %v501_v20  ;;  %v503_v24 = vld [vmem:[%s1338_s5 + $0x20] sm:$0xff] (!%p247_p6)  ;;  %v504_v25 = vld [vmem:[%s1338_s5 + $0x28] sm:$0xff] (!%p247_p6)  ;;  %v505_v34 = vld [vmem:[%s1338_s5 + $0x30] sm:$0xff] (!%p247_p6) }
  0x10   : > { %935 = vmatprep.subr.bf16.mxu1 (!%p247_p6), %v934_v9  ;;  %v954_v26 = vpack.c.bf16 (!%p247_p6), %v504_v25, %v503_v24  ;;  %v824_v27 = vld [vmem:[%s1335_s2] ss:$0 sm:$0xff] (!%p247_p6)  ;;  %v506_v35 = vld [vmem:[%s1338_s5 + $0x38] sm:$0xff] (!%p247_p6) }
  0x11   : > { %v958_v36 = vpack.c.bf16 (!%p247_p6), %v506_v35, %v505_v34  ;;  %v828_v37 = vld [vmem:[%s1337_s4] ss:$0 sm:$0xff] (!%p247_p6) }
  0x12   : > { %s287_s29 = scalar_select %p286_p7, %s1214_s14, 4  ;;  %884 = vmatpush3.msk.msra.mxu0 %vm319_vm0, %v304_v6  ;;  %v831_v44 = vld [vmem:[%s1339_s6] ss:$0 sm:$0xff] }
  0x13   : > { %937 = vmatpush3.bf16.msra.mxu1 %v934_v9  ;;  %947 = vmatprep.subr.bf16.mxu0 %v946_v21  ;;  %s606_s24 = ssub.s32 (%p1203_p4), 5, %s1214_s14  ;;  %s851_s15 = sshll.u32 (%p1203_p4), %s1191_s27, 4 }
  0x14   : > { %s823_s13 = sshll.u32 %s287_s29, 3  ;;  %939 = vmatprep.subr.bf16.mxu1 %v938_v12  ;;  %p607_p8 = scmp.lt.s32.totalorder (%p1203_p4), %s606_s24, 2 }
  0x15   : > { %s289_s17 = scalar_lea.vmem %s1333_s0, %s823_s13  ;;  %s1288_s13 = scalar_lea.vmem [#allocation2], %s821_s10  }
  0x16   : > { %v300_v13 = vld [vmem:[%s289_s17] sm:$0xff]  ;;  %v301_v14 = vld [vmem:[%s289_s17 + $0x8] sm:$0xff]  ;;  %s1299_s18 = scalar_lea.vmem (%p1203_p4), %s1340_s7, %s851_s15  }
  0x17   : > { %885 = vmatprep.mubr.msk.f32.mxu0 %vm312_vm1, %v300_v13  ;;  %941 = vmatpush3.bf16.msra.mxu1 %v938_v12 }
  0x18   : > { %886 = vmatmul.mubr.msk.f32.vlgmr.msra.gmra.mrb[0].mxu0 %vm312_vm1, %v301_v14  ;;  %943 = vmatprep.subr.bf16.mxu1 %v942_v17 }
  0x19   : > { %949 = vmatpush3.bf16.msra.mxu0 %v946_v21 }
  0x1a   : > { %951 = vmatprep.subr.bf16.mxu0 %v950_v23 }
  0x1b   : > { %945 = vmatpush3.bf16.msra.mxu1 %v942_v17 }
  0x1d   : > { %953 = vmatpush3.bf16.msra.mxu0 %v950_v23 }
  0x1e   : > { %955 = vmatprep.subr.bf16.mxu0 %v954_v26 }
  0x21   : > { %957 = vmatpush3.bf16.msra.mxu0 %v954_v26 }
  0x22   : > { %959 = vmatprep.subr.bf16.mxu0 %v958_v36 }
  0x25   : > { %961 = vmatpush3.bf16.msra.mxu0 %v958_v36 }
  0xeb   : > { %v887_v28 = vpop.f32.mrb[0].mxu0 }
  0xec   : > { %v395_v29 = vadd.f32 %v887_v28, %v824_v27  ;;  %v389_v30 = vpop.f32.mrb[1].mxu0 }
  0xed   : > { %v390_v31 = vadd.f32 %v824_v27, %v389_v30 }
  0xee   : > { %v399_v33 = vmax.f32 %v395_v29, 0.0 }
  0xef   : > { %v398_v32 = vmax.f32 %v390_v31, 0.0 }
  0xf1   : > { %904 = vmatprep.mubr.msk.f32.mxu1 %vm415_vm2, %v398_v32 }
  0xf2   : > { %905 = vmatmul.mubr.msk.f32.vlgmr.msra.gmra.mrb[0].mxu1 %vm415_vm2, %v399_v33 }
 0x1c5   : > { %v906_v38 = vpop.f32.mrb[0].mxu1 }
 0x1c6   : > { %v494_v39 = vadd.f32 %v906_v38, %v828_v37  ;;  %v488_v40 = vpop.f32.mrb[1].mxu1 }
 0x1c7   : > { %v489_v41 = vadd.f32 %v828_v37, %v488_v40 }
 0x1c8   : > { %v498_v43 = vmax.f32 %v494_v39, 0.0 }
 0x1c9   : > { %v497_v42 = vmax.f32 %v489_v41, 0.0 }
 0x1cb   : > { %923 = vmatprep.mubr.msk.f32.mxu0 %vm415_vm2, %v497_v42 }
 0x1cc   : > { %924 = vmatmul.mubr.msk.f32.vlgmr.msra.gmra.mrb[2].mxu0 %vm415_vm2, %v498_v43 }
 0x29d   : > { %604 = sbr.rel (!%p1203_p4) target bundleno = 725 (0x2d5), region = 52 }
 0x29f   : > { %v925_v45 = vpop.f32.mrb[2].mxu0 }
 0x2a0   : > { %v592_v46 = vadd.f32 %v925_v45, %v831_v44  ;;  %v586_v47 = vpop.f32.mrb[3].mxu0 }
 0x2a1   : > { %v587_v48 = vadd.f32 %v831_v44, %v586_v47 }
 0x2a2   : > { %597 = vst.msk [vmem:[%s1288_s13 + $0x8] sm:$0xff] %vm595_vm3, %v592_v46 }
 0x2a3   : > { %596 = vst.msk [vmem:[%s1288_s13] sm:$0xff] %vm595_vm3, %v587_v48 }
 0x2a4   : > { %s1346_s24 = smov (!%p607_p8, %s606_s24), 2 }
 0x2a5   : > { %s836_s19 = sshll.u32 %s1346_s24, 7 }
 0x2a6   : > { %p839_p9 = scmp.eq.s32.totalorder %s836_s19, 0 }
 0x2a7   : > { %s1305_s20 = sshrl.u32 (!%p839_p9), %s1346_s24, 1 }
 0x2a8   : > { %615 = sbr.rel (%p839_p9) target bundleno = 725 (0x2d5), region = 56  ;;  %p840_p10 = scmp.le.s32.totalorder (!%p839_p9), %s1305_s20, 0 }
 0x2af   : > { %773 = sbr.rel (%p840_p10) target bundleno = 704 (0x2c0), region = 132  ;;  %s1106_s27 = smov (!%p840_p10), %s1299_s18  }
 0x2b0   : > { %s1110_s9 = smov (!%p840_p10), %s1288_s13   ;;  %s1114_s14 = smov (!%p840_p10), 0  }
 0x2b1   : > { %s1118_s21 = smov (!%p840_p10), 0  }
 0x2b6 LB: >> { %v679_v49 = vld [vmem:[%s1112_s9] sm:$0xff]  ;;  %v681_v50 = vld [vmem:[%s1112_s9 + $0x8] sm:$0xff]  ;;  %s683_s22 = sadd.s32 1, %s1116_s14  ;;  %s673_s21 = sadd.s32 1, %s1120_s21   ;;  %s1120_s21 = sphi %s1118_s21, %s673_s21   ;;  %s1116_s14 = sphi %s1114_s14, %s1115_s14   ;;  %s1112_s9 = sphi %s1110_s9, %s688_s9   ;;  %s1108_s27 = sphi %s1106_s27, %s689_s27  }
 0x2b7   : >> { %680 = vst [vmem:[%s1108_s27] sm:$0xff] %v679_v49  ;;  %682 = vst [vmem:[%s1108_s27 + $0x8] sm:$0xff] %v681_v50  ;;  %p684_p11 = scmp.ge.s32.totalorder %s683_s22, %s1305_s20  ;;  %p672_p12 = scmp.ge.s32.totalorder %s673_s21, %s1305_s20 }
 0x2b9   : >> { %s1348_s22 = smov (%p684_p11, %s683_s22), 0  ;;  %675 = sbr.rel (!%p672_p12) target bundleno = 694 (0x2b6), region = 138 }
 0x2ba   : >> { %s841_s23 = sshll.u32 %s1348_s22, 4  ;;  %s1115_s14 = smov %s1348_s22  }
 0x2bb   : >> { %s688_s9 = scalar_lea.vmem %s1288_s13, %s841_s23 [#allocation2]   ;;  %s689_s27 = scalar_lea.vmem %s1299_s18, %s841_s23  }
 0x2c0 PF: > { %s1315_s26 = sand.u32 1, %s1346_s24   ;;  %s852_s29 = sshll.u32 %s1305_s20, 4 }
 0x2c1   : > { %s694_s30 = scalar_lea.vmem %s1288_s13, %s852_s29 [#allocation2]   ;;  %s696_s10 = scalar_lea.vmem %s1299_s18, %s852_s29  }
 0x2c2   : > { %p846_p13 = scmp.le.s32.totalorder %s1315_s26, 0 }
 0x2c3   : > { %s1122_s11 = smov (!%p846_p13), %s696_s10   ;;  %s1126_s12 = smov (!%p846_p13), %s694_s30  }
 0x2c4   : > { %787 = sbr.rel (%p846_p13) target bundleno = 725 (0x2d5), region = 143  ;;  %s1130_s15 = smov (!%p846_p13), 0  }
 0x2c5   : > { %s1134_s16 = smov (!%p846_p13), 0  }
 0x2cb LB: >> { %v706_v51 = vld [vmem:[%s1128_s12] sm:$0xff]  ;;  %s708_s24 = sadd.s32 1, %s1132_s15  ;;  %s700_s16 = sadd.s32 1, %s1136_s16   ;;  %s1136_s16 = sphi %s1134_s16, %s700_s16   ;;  %s1132_s15 = sphi %s1130_s15, %s1131_s15   ;;  %s1128_s12 = sphi %s1126_s12, %s713_s12   ;;  %s1124_s11 = sphi %s1122_s11, %s714_s11  }
 0x2cc   : >> { %707 = vst [vmem:[%s1124_s11] sm:$0xff] %v706_v51  ;;  %p709_p0 = scmp.ge.s32.totalorder %s708_s24, %s1315_s26  ;;  %p699_p1 = scmp.ge.s32.totalorder %s700_s16, %s1315_s26 }
 0x2ce   : >> { %s1350_s24 = smov (%p709_p0, %s708_s24), 0  ;;  %702 = sbr.rel (!%p699_p1) target bundleno = 715 (0x2cb), region = 149 }
 0x2cf   : >> { %s847_s13 = sshll.u32 %s1350_s24, 3  ;;  %s1131_s15 = smov %s1350_s24  }
 0x2d0   : >> { %s713_s12 = scalar_lea.vmem %s694_s30, %s847_s13 [#allocation2]   ;;  %s714_s11 = scalar_lea.vmem %s696_s10, %s847_s13  }
 0x2d5 PF: > { %p14_p2 = scmp.ge.s32.totalorder %s1193_s28, 5   ;;  %s1342_s24 = smov %s1100_s25 }
 0x2d6   : > { %s1343_s25 = smov %s1201_s8  ;;  %s1344_s26 = smov %s1193_s28 }
 0x2d7   :  { %16 = sbr.rel (!%p14_p2) target bundleno = 2 (0x2), region = 160 }

</bundles_post_ra>
